<compile_context>
chip_gen: v6e
topology: v6e:2x2x1
jax: 0.10.0
libtpu: 0.0.40
codegen_flags: <defaults>
</compile_context>

<pallas_src>
import functools
import math

import jax
import jax.numpy as jnp
from jax import lax
from jax.experimental import pallas as pl
from jax.experimental.pallas import tpu as pltpu

_LANES = 128          # vreg lane width
_MASK = -1e30         # finite "-inf" for masked (padded) key columns


def _round_up(x, m):
    return (x + m - 1) // m * m


# ---------------------------------------------------------------------------
# Single-pass kernel: the whole (padded) K/V sequence is one block, the kv grid
# axis has length 1, K/V block indices ignore the q-block axis (fetched once
# per batch*head), and there is no online-softmax carry at all.
# ---------------------------------------------------------------------------
def _attend_single_kernel(q_ref, k_ref, v_ref, o_ref, *,
                          scale, n_valid, n_kv, mm_dtype):
    # Fold softmax scale into q before the matmul.
    q = (q_ref[0] * scale).astype(mm_dtype)                  # (tq, D)
    k = k_ref[0].astype(mm_dtype)                            # (n_kv, D)
    v = v_ref[0].astype(mm_dtype)                            # (n_kv, D)

    # sim = q @ k^T : native bf16 MXU matmul, f32 accumulation.
    s = lax.dot_general(q, k, (((1,), (1,)), ((), ())),
                        preferred_element_type=jnp.float32)  # (tq, n_kv)

    if n_valid != n_kv:                                      # static: padded?
        col = lax.broadcasted_iota(jnp.int32, s.shape, 1)
        s = jnp.where(col < n_valid, s, _MASK)

    m = jnp.max(s, axis=-1, keepdims=True)                   # (tq, 1)
    p = jnp.exp(s - m)                                       # f32 softmax math
    l = jnp.sum(p, axis=-1, keepdims=True)                   # (tq, 1)

    pv = jnp.dot(p.astype(mm_dtype), v,
                 preferred_element_type=jnp.float32)         # (tq, D)
    o_ref[0] = (pv * pl.reciprocal(l, approx=True)).astype(o_ref.dtype)


# ---------------------------------------------------------------------------
# Flash (online-softmax) kernel for long sequences: kv axis is the "arbitrary"
# reduction axis; running max / sum are kept lane-dense (tq, 128) in VMEM.
# ---------------------------------------------------------------------------
def _attend_flash_kernel(q_ref, k_ref, v_ref, o_ref, m_scr, l_scr, acc_scr, *,
                         scale, n_valid, n_kv, block_k, mm_dtype):
    ki = pl.program_id(2)

    @pl.when(ki == 0)
    def _():
        m_scr[...] = jnp.full_like(m_scr, -jnp.inf)
        l_scr[...] = jnp.zeros_like(l_scr)
        acc_scr[...] = jnp.zeros_like(acc_scr)

    q = (q_ref[0] * scale).astype(mm_dtype)                  # (tq, D)
    k = k_ref[0].astype(mm_dtype)                            # (tk, D)
    v = v_ref[0].astype(mm_dtype)                            # (tk, D)

    s = lax.dot_general(q, k, (((1,), (1,)), ((), ())),
                        preferred_element_type=jnp.float32)  # (tq, tk)

    if n_valid != n_kv:                                      # static: padded?
        col = ki * block_k + lax.broadcasted_iota(jnp.int32, s.shape, 1)
        s = jnp.where(col < n_valid, s, _MASK)

    # Lane-replicated running statistics (tq, 128): plain VPU updates.
    m_prev = m_scr[...]
    l_prev = l_scr[...]
    m_curr = jnp.max(s, axis=-1, keepdims=True)              # (tq, 1)
    m_next = jnp.maximum(m_prev, m_curr)                     # (tq, 128)
    alpha = jnp.exp(m_prev - m_next)                         # (tq, 128)

    reps = block_k // _LANES
    m_bk = m_next if reps == 1 else jnp.tile(m_next, (1, reps))
    p = jnp.exp(s - m_bk)                                    # (tq, tk)

    l_scr[...] = alpha * l_prev + jnp.sum(p, axis=-1, keepdims=True)
    m_scr[...] = m_next
    acc_scr[...] = acc_scr[...] * alpha[:, :1] + jnp.dot(
        p.astype(mm_dtype), v, preferred_element_type=jnp.float32)

    @pl.when(ki == pl.num_programs(2) - 1)
    def _():
        inv_l = pl.reciprocal(l_scr[...], approx=True)[:, :1]   # (tq, 1)
        o_ref[0] = (acc_scr[...] * inv_l).astype(o_ref.dtype)


@functools.partial(
    jax.jit,
    static_argnames=("block_q", "block_k", "single_pass_max", "matmul_dtype"))
def attend(q, k, v, *, block_q=None, block_k=None,
           single_pass_max=2048, matmul_dtype=jnp.bfloat16):
    """q, k, v: (B, H, N, D) -> (B, H, N, D). Matches Attend.forward (p=0)."""
    B, H, N, D = q.shape
    assert k.shape == (B, H, N, D) and v.shape == (B, H, N, D)

    scale = float(D) ** -0.5
    BH = B * H
    n8 = _round_up(N, 8)

    # Single pass iff the whole K/V sequence comfortably fits as one block.
    single_pass = (block_k is None and n8 <= single_pass_max) or \
                  (block_k is not None and block_k >= n8)

    if block_q is None:
        # Flash path uses a bigger q tile to cut K/V HBM re-fetches; the
        # single-pass path keeps tq smaller for megacore balance (v7x).
        block_q = 128 if single_pass else 256
    block_q = _round_up(max(8, min(block_q, n8)), 8)

    if single_pass:
        n_pad = _round_up(N, block_q)
        block_k = n_pad
    else:
        if block_k is None:
            block_k = 256            # fills the 256-wide MXU on v6e/v7x
        block_k = _round_up(block_k, _LANES)
        n_pad = _round_up(N, math.lcm(block_q, block_k))

    q3 = q.reshape(BH, N, D)
    k3 = k.reshape(BH, N, D)
    v3 = v.reshape(BH, N, D)
    if n_pad != N:
        pad = ((0, 0), (0, n_pad - N), (0, 0))
        q3 = jnp.pad(q3, pad)
        k3 = jnp.pad(k3, pad)
        v3 = jnp.pad(v3, pad)

    if single_pass:
        kernel = functools.partial(
            _attend_single_kernel, scale=scale, n_valid=N, n_kv=n_pad,
            mm_dtype=matmul_dtype)
        out = pl.pallas_call(
            kernel,
            out_shape=jax.ShapeDtypeStruct((BH, n_pad, D), q.dtype),
            grid_spec=pltpu.PrefetchScalarGridSpec(
                num_scalar_prefetch=0,
                grid=(BH, n_pad // block_q),
                in_specs=[
                    pl.BlockSpec((1, block_q, D), lambda b, qi: (b, qi, 0)),
                    # K/V block index ignores qi -> fetched once per (b, h).
                    pl.BlockSpec((1, n_pad, D), lambda b, qi: (b, 0, 0)),
                    pl.BlockSpec((1, n_pad, D), lambda b, qi: (b, 0, 0)),
                ],
                out_specs=pl.BlockSpec((1, block_q, D),
                                       lambda b, qi: (b, qi, 0)),
            ),
            compiler_params=pltpu.CompilerParams(
                dimension_semantics=("parallel", "parallel")),
        )(q3, k3, v3)
    else:
        kernel = functools.partial(
            _attend_flash_kernel, scale=scale, n_valid=N, n_kv=n_pad,
            block_k=block_k, mm_dtype=matmul_dtype)
        out = pl.pallas_call(
            kernel,
            out_shape=jax.ShapeDtypeStruct((BH, n_pad, D), q.dtype),
            grid_spec=pltpu.PrefetchScalarGridSpec(
                num_scalar_prefetch=0,
                grid=(BH, n_pad // block_q, n_pad // block_k),
                in_specs=[
                    pl.BlockSpec((1, block_q, D), lambda b, qi, ki: (b, qi, 0)),
                    pl.BlockSpec((1, block_k, D), lambda b, qi, ki: (b, ki, 0)),
                    pl.BlockSpec((1, block_k, D), lambda b, qi, ki: (b, ki, 0)),
                ],
                out_specs=pl.BlockSpec((1, block_q, D),
                                       lambda b, qi, ki: (b, qi, 0)),
                scratch_shapes=[
                    pltpu.VMEM((block_q, _LANES), jnp.float32),  # running max
                    pltpu.VMEM((block_q, _LANES), jnp.float32),  # running sum
                    pltpu.VMEM((block_q, D), jnp.float32),       # output acc
                ],
            ),
            compiler_params=pltpu.CompilerParams(
                dimension_semantics=("parallel", "parallel", "arbitrary")),
        )(q3, k3, v3)

    if n_pad != N:
        out = out[:, :N, :]
    return out.reshape(B, H, N, D)


def reference(q, k, v):
    scale = q.shape[-1] ** -0.5
    sim = jnp.einsum("bhid,bhjd->bhij", q, k) * scale
    attn = jax.nn.softmax(sim, axis=-1)
    return jnp.einsum("bhij,bhjd->bhid", attn, v)


def _check(out, ref, tag):
    assert out.shape == ref.shape, (tag, out.shape, ref.shape)
    # Tolerance sized for bf16 MXU matmuls + approx reciprocal.
    assert jnp.allclose(out, ref, atol=2e-2, rtol=2e-2), f"mismatch: {tag}"


if __name__ == "__main__":
    key = jax.random.PRNGKey(0)
    kq, kk, kv_ = jax.random.split(key, 3)

    # 1) Main case: single-pass path, no padding.
    B, H, N, D = 2, 4, 128, 64
    q = jax.random.normal(kq, (B, H, N, D), dtype=jnp.float32)
    k = jax.random.normal(kk, (B, H, N, D), dtype=jnp.float32)
    v = jax.random.normal(kv_, (B, H, N, D), dtype=jnp.float32)
    out = jax.block_until_ready(attend(q, k, v))
    _check(out, reference(q, k, v), "single-pass")

    # 2) Flash (multi kv-block) path with padding/masking and 256-wide kv tile.
    B2, H2, N2, D2 = 2, 2, 384, 64
    q2 = jax.random.normal(kq, (B2, H2, N2, D2), dtype=jnp.float32)
    k2 = jax.random.normal(kk, (B2, H2, N2, D2), dtype=jnp.float32)
    v2 = jax.random.normal(kv_, (B2, H2, N2, D2), dtype=jnp.float32)
    out2 = jax.block_until_ready(attend(q2, k2, v2, block_q=128, block_k=256))
    _check(out2, reference(q2, k2, v2), "flash")

    # 3) Non-tile-aligned sequence length: single-pass path with key masking.
    B3, H3, N3, D3 = 1, 2, 70, 32
    q3 = jax.random.normal(kq, (B3, H3, N3, D3), dtype=jnp.float32)
    k3 = jax.random.normal(kk, (B3, H3, N3, D3), dtype=jnp.float32)
    v3 = jax.random.normal(kv_, (B3, H3, N3, D3), dtype=jnp.float32)
    out3 = jax.block_until_ready(attend(q3, k3, v3))
    _check(out3, reference(q3, k3, v3), "single-pass-masked")

    print("KERNEL_OK")
</pallas_src>

<mosaic_0001>
module attributes {stable_mosaic.version = 11 : i64} {
  func.func @_attend_single_kernel(%arg0: i32, %arg1: i32, %arg2: memref<1x128x64xf32, #tpu.memory_space<vmem>>, %arg3: memref<1x128x64xf32, #tpu.memory_space<vmem>>, %arg4: memref<1x128x64xf32, #tpu.memory_space<vmem>>, %arg5: memref<1x128x64xf32, #tpu.memory_space<vmem>>) attributes {dimension_semantics = [#tpu.dimension_semantics<parallel>, #tpu.dimension_semantics<parallel>], iteration_bounds = array<i64: 8, 1>, scalar_prefetch = 0 : i64, scratch_operands = 0 : i64, tpu.core_type = #tpu.core_type<tc>, window_params = [{transform_indices = @transform_0, window_bounds = array<i64: 1, 128, 64>}, {transform_indices = @transform_1, window_bounds = array<i64: 1, 128, 64>}, {transform_indices = @transform_2, window_bounds = array<i64: 1, 128, 64>}, {transform_indices = @transform_3, window_bounds = array<i64: 1, 128, 64>}]} {
    %c0 = arith.constant 0 : index
    %c0_0 = arith.constant 0 : index
    %c0_1 = arith.constant 0 : index
    %0 = vector.load %arg2[%c0, %c0_0, %c0_1] : memref<1x128x64xf32, #tpu.memory_space<vmem>>, vector<1x128x64xf32>
    %1 = vector.shape_cast %0 : vector<1x128x64xf32> to vector<128x64xf32>
    %cst = arith.constant 1.250000e-01 : f32
    %2 = vector.broadcast %cst : f32 to vector<128x64xf32>
    %3 = arith.mulf %1, %2 : vector<128x64xf32>
    %4 = arith.truncf %3 : vector<128x64xf32> to vector<128x64xbf16>
    %c0_2 = arith.constant 0 : index
    %c0_3 = arith.constant 0 : index
    %c0_4 = arith.constant 0 : index
    %5 = vector.load %arg3[%c0_2, %c0_3, %c0_4] : memref<1x128x64xf32, #tpu.memory_space<vmem>>, vector<1x128x64xf32>
    %6 = vector.shape_cast %5 : vector<1x128x64xf32> to vector<128x64xf32>
    %7 = arith.truncf %6 : vector<128x64xf32> to vector<128x64xbf16>
    %c0_5 = arith.constant 0 : index
    %c0_6 = arith.constant 0 : index
    %c0_7 = arith.constant 0 : index
    %8 = vector.load %arg4[%c0_5, %c0_6, %c0_7] : memref<1x128x64xf32, #tpu.memory_space<vmem>>, vector<1x128x64xf32>
    %9 = vector.shape_cast %8 : vector<1x128x64xf32> to vector<128x64xf32>
    %10 = arith.truncf %9 : vector<128x64xf32> to vector<128x64xbf16>
    %cst_8 = arith.constant dense<0.000000e+00> : vector<128x128xf32>
    %11 = tpu.matmul %4, %7, %cst_8 {dimension_numbers = #tpu.dot_dimension_numbers<[1], [1], [0], [0], [0, 0, 1, 0], [], []>} : vector<128x64xbf16>, vector<128x64xbf16>, vector<128x128xf32> -> vector<128x128xf32>
    %cst_9 = arith.constant dense<0xFF800000> : vector<128xf32>
    %12 = vector.multi_reduction <maximumf>, %11, %cst_9 [1] : vector<128x128xf32> to vector<128xf32>
    %13 = vector.shape_cast %12 : vector<128xf32> to vector<128x1xf32>
    %14 = vector.broadcast %13 : vector<128x1xf32> to vector<128x128xf32>
    %15 = arith.subf %11, %14 : vector<128x128xf32>
    %16 = math.exp %15 : vector<128x128xf32>
    %cst_10 = arith.constant dense<0.000000e+00> : vector<128xf32>
    %17 = vector.multi_reduction <add>, %16, %cst_10 [1] : vector<128x128xf32> to vector<128xf32>
    %18 = vector.shape_cast %17 : vector<128xf32> to vector<128x1xf32>
    %19 = arith.truncf %16 : vector<128x128xf32> to vector<128x128xbf16>
    %cst_11 = arith.constant dense<0.000000e+00> : vector<128x64xf32>
    %20 = tpu.matmul %19, %10, %cst_11 {dimension_numbers = #tpu.dot_dimension_numbers<[1], [0], [0], [1], [0, 0, 1, 1], [], []>} : vector<128x128xbf16>, vector<128x64xbf16>, vector<128x64xf32> -> vector<128x64xf32>
    %21 = tpu.reciprocal %18 {approx = true} : vector<128x1xf32> -> vector<128x1xf32>
    %22 = vector.broadcast %21 : vector<128x1xf32> to vector<128x64xf32>
    %23 = arith.mulf %20, %22 : vector<128x64xf32>
    %c0_12 = arith.constant 0 : index
    %c0_13 = arith.constant 0 : index
    %c0_14 = arith.constant 0 : index
    %24 = vector.load %arg5[%c0_12, %c0_13, %c0_14] : memref<1x128x64xf32, #tpu.memory_space<vmem>>, vector<1x128x64xf32>
    %25 = vector.shape_cast %24 : vector<1x128x64xf32> to vector<128x64xf32>
    %26 = vector.shape_cast %23 : vector<128x64xf32> to vector<1x128x64xf32>
    tpu.vector_store %arg5[%c0_12, %c0_13, %c0_14], %26 {strides = array<i32>} : memref<1x128x64xf32, #tpu.memory_space<vmem>>, vector<1x128x64xf32>,
    return
  }
  func.func @transform_0(%arg0: i32, %arg1: i32) -> (i32, i32, i32) {
    %c0_i32 = arith.constant 0 : i32
    %c0_i32_0 = arith.constant 0 : i32
    return %arg0, %arg1, %c0_i32 : i32, i32, i32
  }
  func.func @transform_1(%arg0: i32, %arg1: i32) -> (i32, i32, i32) {
    %c0_i32 = arith.constant 0 : i32
    %c0_i32_0 = arith.constant 0 : i32
    %c0_i32_1 = arith.constant 0 : i32
    return %arg0, %c0_i32, %c0_i32_0 : i32, i32, i32
  }
  func.func @transform_2(%arg0: i32, %arg1: i32) -> (i32, i32, i32) {
    %c0_i32 = arith.constant 0 : i32
    %c0_i32_0 = arith.constant 0 : i32
    %c0_i32_1 = arith.constant 0 : i32
    return %arg0, %c0_i32, %c0_i32_0 : i32, i32, i32
  }
  func.func @transform_3(%arg0: i32, %arg1: i32) -> (i32, i32, i32) {
    %c0_i32 = arith.constant 0 : i32
    %c0_i32_0 = arith.constant 0 : i32
    return %arg0, %arg1, %c0_i32 : i32, i32, i32
  }
}

</mosaic_0001>

<bundles_post_ra>
// kernel: attend.1
= control target key start
LH: loop header
LB: loop body
LE: loop exit
PB: predicated region body
PF: predicated region fallthrough
CT: control target
= control target key end

     0   :  { %s1124_s12 = smov 0   ;;  %s1126_s13 = smov 0   ;;  %s1345_s0 = inlined_call_operand.vmem [shape: f32[8,128,64], index: 0, kind: input, shape index: {}]   ;;  %s1346_s1 = inlined_call_operand.vmem [shape: f32[8,128,64], index: 1, kind: input, shape index: {}]   ;;  %s1347_s2 = inlined_call_operand.vmem [shape: f32[8,128,64], index: 2, kind: input, shape index: {}]   ;;  %s1348_s3 = inlined_call_operand.vmem [shape: f32[8,128,64], index: 3, kind: output, shape index: {}]  }
   0x1   :  { %s1128_s14 = smov 0  }
   0x2 LB: > { %s25_s15 = sadd.s32 1, %s1098_s13  ;;  %p865_p0 = scmp.ge.s32.totalorder %s1102_s14, 1  ;;  %s1102_s14 = sphi %s1128_s14, %s13_s14   ;;  %s1098_s13 = sphi %s1126_s13, %s1350_s13   ;;  %s1094_s12 = sphi %s1124_s12, %s1349_s12  }
   0x3   : > { %p27_p1 = scmp.ge.s32.totalorder %s25_s15, 8  ;;  %p178_p2 = scmp.lt.s32.totalorder %s1102_s14, 9 }
   0x5   : > { %s1352_s15 = smov (%p27_p1, %s25_s15), 0  ;;  %p179_p3 = pnand %p865_p0, %p178_p2 }
   0x6   : > { %p221_p4 = scmp.lt.s32.totalorder (!%p179_p3), %s1094_s12, 7 }
   0x7   : > { %182 = sbr.rel (%p179_p3) target bundleno = 669 (0x29d), region = 32 }
   0xc   : > { %s1354_s12 = smov (!%p221_p4, %s1094_s12), 7  ;;  %vm339_vm0 = vcmask 523264  }
   0xd   : > { %s1142_s16 = sshll.u32 %s1354_s12, 7 }
   0xe   : > { %s1148_s19 = scalar_lea.vmem %s1346_s1, %s1142_s16  ;;  %s1158_s22 = scalar_lea.vmem %s1345_s0, %s1142_s16 }
   0xf   : > { %v305_v0 = vld [vmem:[%s1148_s19 + $0x70] sm:$0xff]  ;;  %v306_v1 = vld [vmem:[%s1148_s19 + $0x78] sm:$0xff]  ;;  %v303_v2 = vld [vmem:[%s1148_s19 + $0x60] sm:$0xff]  ;;  %s1216_s25 = scalar_lea.vmem %s1347_s2, %s1142_s16  ;;  %s1302_s28 = scalar_lea.vmem %s1348_s3, %s1142_s16 }
  0x10   : > { %v314_v3 = vpack.c.bf16 %v306_v1, %v305_v0  ;;  %v304_v4 = vld [vmem:[%s1148_s19 + $0x68] sm:$0xff]  ;;  %v251_v7 = vld [vmem:[%s1158_s22] sm:$0xff]  ;;  %v301_v9 = vld [vmem:[%s1148_s19 + $0x50] sm:$0xff] }
  0x11   : > { %v313_v5 = vpack.c.bf16 %v304_v4, %v303_v2  ;;  %v252_v8 = vld [vmem:[%s1158_s22 + $0x8] sm:$0xff]  ;;  %v302_v10 = vld [vmem:[%s1148_s19 + $0x58] sm:$0xff]  ;;  %v267_v11 = vmul.f32 0.125, %v251_v7  ;;  %v299_v16 = vld [vmem:[%s1148_s19 + $0x40] sm:$0xff] }
  0x12   : > { %984 = vmatprep.subr.msk.bf16.mxu0 %vm339_vm0, %v314_v3  ;;  %v386_v6 = vsel %vm339_vm0, %v314_v3, 0  ;;  %v268_v12 = vmul.f32 0.125, %v252_v8  ;;  %v312_v14 = vpack.c.bf16 %v302_v10, %v301_v9  ;;  %v300_v17 = vld [vmem:[%s1148_s19 + $0x48] sm:$0xff]  ;;  %v297_v20 = vld [vmem:[%s1148_s19 + $0x30] sm:$0xff]  ;;  %v298_v21 = vld [vmem:[%s1148_s19 + $0x38] sm:$0xff] }
  0x13   : > { %921 = vmatpush3.bf16.xpose.msra.mxu0 %v386_v6  ;;  %v383_v13 = vsel %vm339_vm0, %v313_v5, 0  ;;  %v311_v19 = vpack.c.bf16 %v300_v17, %v299_v16  ;;  %v310_v23 = vpack.c.bf16 %v298_v21, %v297_v20  ;;  %v295_v24 = vld [vmem:[%s1148_s19 + $0x20] sm:$0xff]  ;;  %v296_v25 = vld [vmem:[%s1148_s19 + $0x28] sm:$0xff]  ;;  %v293_v28 = vld [vmem:[%s1148_s19 + $0x10] sm:$0xff] }
  0x14   : > { %985 = vmatprep.subr.msk.bf16.mxu0 %vm339_vm0, %v313_v5  ;;  %v283_v15 = vpack.c.bf16 %v268_v12, %v267_v11  ;;  %v380_v18 = vsel %vm339_vm0, %v312_v14, 0  ;;  %v309_v27 = vpack.c.bf16 %v296_v25, %v295_v24  ;;  %v294_v29 = vld [vmem:[%s1148_s19 + $0x18] sm:$0xff]  ;;  %v291_v32 = vld [vmem:[%s1148_s19] sm:$0xff]  ;;  %v292_v33 = vld [vmem:[%s1148_s19 + $0x8] sm:$0xff] }
  0x15   : > { %v377_v22 = vsel %vm339_vm0, %v311_v19, 0  ;;  %v374_v26 = vsel %vm339_vm0, %v310_v23, 0  ;;  %v308_v31 = vpack.c.bf16 %v294_v29, %v293_v28  ;;  %v307_v35 = vpack.c.bf16 %v292_v33, %v291_v32  ;;  %v253_v36 = vld [vmem:[%s1158_s22 + $0x10] sm:$0xff]  ;;  %v254_v37 = vld [vmem:[%s1158_s22 + $0x18] sm:$0xff]  ;;  %v255_v39 = vld [vmem:[%s1158_s22 + $0x20] sm:$0xff] }
  0x16   : > { %936 = vmatprep.mubr.msk.bf16.mxu0 %vm339_vm0, %v283_v15  ;;  %v371_v30 = vsel %vm339_vm0, %v309_v27, 0  ;;  %v256_v40 = vld [vmem:[%s1158_s22 + $0x28] sm:$0xff]  ;;  %v269_v41 = vmul.f32 0.125, %v253_v36  ;;  %v270_v42 = vmul.f32 0.125, %v254_v37  ;;  %v271_v43 = vmul.f32 0.125, %v255_v39  ;;  %v257_v47 = vld [vmem:[%s1158_s22 + $0x30] sm:$0xff] }
  0x17   : > { %v368_v34 = vsel %vm339_vm0, %v308_v31, 0  ;;  %v365_v38 = vsel %vm339_vm0, %v307_v35, 0  ;;  %v272_v44 = vmul.f32 0.125, %v256_v40  ;;  %v258_v48 = vld [vmem:[%s1158_s22 + $0x38] sm:$0xff]  ;;  %v259_v49 = vld [vmem:[%s1158_s22 + $0x40] sm:$0xff]  ;;  %v260_v50 = vld [vmem:[%s1158_s22 + $0x48] sm:$0xff] }
  0x18   : > { %v284_v45 = vpack.c.bf16 %v270_v42, %v269_v41  ;;  %v273_v51 = vmul.f32 0.125, %v257_v47  ;;  %v274_v52 = vmul.f32 0.125, %v258_v48  ;;  %v275_v53 = vmul.f32 0.125, %v259_v49  ;;  %v261_v57 = vld [vmem:[%s1158_s22 + $0x50] sm:$0xff]  ;;  %v262_v58 = vld [vmem:[%s1158_s22 + $0x58] sm:$0xff]  ;;  %v263_v59 = vld [vmem:[%s1158_s22 + $0x60] sm:$0xff] }
  0x19   : > { %v285_v46 = vpack.c.bf16 %v272_v44, %v271_v43  ;;  %v276_v54 = vmul.f32 0.125, %v260_v50  ;;  %v264_v60 = vld [vmem:[%s1158_s22 + $0x68] sm:$0xff]  ;;  %v277_v61 = vmul.f32 0.125, %v261_v57  ;;  %v278_v62 = vmul.f32 0.125, %v262_v58  ;;  %v265_v3 = vld [vmem:[%s1158_s22 + $0x70] sm:$0xff]  ;;  %v266_v4 = vld [vmem:[%s1158_s22 + $0x78] sm:$0xff] }
  0x1a   : > { %v286_v55 = vpack.c.bf16 %v274_v52, %v273_v51  ;;  %v279_v63 = vmul.f32 0.125, %v263_v59  ;;  %v280_v0 = vmul.f32 0.125, %v264_v60  ;;  %v281_v5 = vmul.f32 0.125, %v265_v3  ;;  %v329_v8 = vld [vmem:[%s1216_s25 + $0x70] sm:$0xff]  ;;  %v330_v9 = vld [vmem:[%s1216_s25 + $0x78] sm:$0xff]  ;;  %v327_v10 = vld [vmem:[%s1216_s25 + $0x60] sm:$0xff] }
  0x1b   : > { %923 = vmatpush3.bf16.xpose.msra.mxu0 %v383_v13  ;;  %v287_v56 = vpack.c.bf16 %v276_v54, %v275_v53  ;;  %v288_v1 = vpack.c.bf16 %v278_v62, %v277_v61  ;;  %v282_v6 = vmul.f32 0.125, %v266_v4  ;;  %v338_v11 = vpack.c.bf16 %v330_v9, %v329_v8  ;;  %v328_v12 = vld [vmem:[%s1216_s25 + $0x68] sm:$0xff]  ;;  %v325_v20 = vld [vmem:[%s1216_s25 + $0x50] sm:$0xff]  ;;  %v326_v21 = vld [vmem:[%s1216_s25 + $0x58] sm:$0xff] }
  0x1c   : > { %986 = vmatprep.subr.msk.bf16.mxu0 %vm339_vm0, %v312_v14  ;;  %v289_v2 = vpack.c.bf16 %v280_v0, %v279_v63  ;;  %v337_v13 = vpack.c.bf16 %v328_v12, %v327_v10  ;;  %v323_v25 = vld [vmem:[%s1216_s25 + $0x40] sm:$0xff]  ;;  %v320_v37 = vld [vmem:[%s1216_s25 + $0x28] sm:$0xff]  ;;  %v317_v41 = vld [vmem:[%s1216_s25 + $0x10] sm:$0xff] }
  0x1d   : > { %v290_v7 = vpack.c.bf16 %v282_v6, %v281_v5  ;;  %952 = vmatprep.subr.bf16.mxu1 %v338_v11  ;;  %v319_v36 = vld [vmem:[%s1216_s25 + $0x20] sm:$0xff]  ;;  %v318_v42 = vld [vmem:[%s1216_s25 + $0x18] sm:$0xff] }
  0x1e   : > { %953 = vmatpush3.bf16.msra.mxu1 %v338_v11  ;;  %v332_v43 = vpack.c.bf16 %v318_v42, %v317_v41 }
  0x1f   : > { %954 = vmatprep.subr.bf16.mxu1 %v337_v13 }
  0x22   : > { %955 = vmatpush3.bf16.msra.mxu1 %v337_v13 }
  0x23   : > { %925 = vmatpush3.bf16.xpose.msra.mxu0 %v380_v18 }
  0x24   : > { %987 = vmatprep.subr.msk.bf16.mxu0 %vm339_vm0, %v311_v19 }
  0x2b   : > { %927 = vmatpush3.bf16.xpose.msra.mxu0 %v377_v22 }
  0x2c   : > { %988 = vmatprep.subr.msk.bf16.mxu0 %vm339_vm0, %v310_v23  ;;  %v336_v23 = vpack.c.bf16 %v326_v21, %v325_v20 }
  0x2e   : > { %956 = vmatprep.subr.bf16.mxu1 %v336_v23 }
  0x2f   : > { %957 = vmatpush3.bf16.msra.mxu1 %v336_v23 }
  0x33   : > { %929 = vmatpush3.bf16.xpose.msra.mxu0 %v374_v26  ;;  %v324_v26 = vld [vmem:[%s1216_s25 + $0x48] sm:$0xff] }
  0x34   : > { %989 = vmatprep.subr.msk.bf16.mxu0 %vm339_vm0, %v309_v27  ;;  %v335_v28 = vpack.c.bf16 %v324_v26, %v323_v25 }
  0x36   : > { %958 = vmatprep.subr.bf16.mxu1 %v335_v28 }
  0x37   : > { %959 = vmatpush3.bf16.msra.mxu1 %v335_v28 }
  0x3b   : > { %931 = vmatpush3.bf16.xpose.msra.mxu0 %v371_v30  ;;  %v321_v30 = vld [vmem:[%s1216_s25 + $0x30] sm:$0xff] }
  0x3c   : > { %990 = vmatprep.subr.msk.bf16.mxu0 %vm339_vm0, %v308_v31  ;;  %v322_v31 = vld [vmem:[%s1216_s25 + $0x38] sm:$0xff] }
  0x3d   : > { %v334_v33 = vpack.c.bf16 %v322_v31, %v321_v30 }
  0x3f   : > { %960 = vmatprep.subr.bf16.mxu1 %v334_v33 }
  0x40   : > { %961 = vmatpush3.bf16.msra.mxu1 %v334_v33 }
  0x43   : > { %933 = vmatpush3.bf16.xpose.msra.mxu0 %v368_v34 }
  0x44   : > { %991 = vmatprep.subr.msk.bf16.mxu0 %vm339_vm0, %v307_v35 }
  0x4b   : > { %935 = vmatpush3.bf16.xpose.msra.mxu0 %v365_v38  ;;  %v333_v38 = vpack.c.bf16 %v320_v37, %v319_v36 }
  0x4d   : > { %962 = vmatprep.subr.bf16.mxu1 %v333_v38 }
  0x4e   : > { %963 = vmatpush3.bf16.msra.mxu1 %v333_v38 }
  0x4f   : > { %964 = vmatprep.subr.bf16.mxu1 %v332_v43 }
  0x52   : > { %937 = vmatmul.mubr.msk.bf16.vlgmr.msra.gmra.mxu0 %vm339_vm0, %v284_v45  ;;  %v315_v45 = vld [vmem:[%s1216_s25] sm:$0xff]  ;;  %965 = vmatpush3.bf16.msra.mxu1 %v332_v43 }
  0x53   : > { %940 = vmatprep.mubr.msk.bf16.mxu0 %vm339_vm0, %v285_v46  ;;  %v316_v46 = vld [vmem:[%s1216_s25 + $0x8] sm:$0xff] }
  0x54   : > { %v331_v47 = vpack.c.bf16 %v316_v46, %v315_v45 }
  0x56   : > { %966 = vmatprep.subr.bf16.mxu1 %v331_v47 }
  0x57   : > { %967 = vmatpush3.bf16.msra.mxu1 %v331_v47 }
  0x5a   : > { %941 = vmatmul.mubr.msk.bf16.gmra.mxu0 %vm339_vm0, %v286_v55 }
  0x5b   : > { %944 = vmatprep.mubr.msk.bf16.mxu0 %vm339_vm0, %v287_v56 }
  0x62   : > { %945 = vmatmul.mubr.msk.bf16.gmra.mxu0 %vm339_vm0, %v288_v1 }
  0x63   : > { %948 = vmatprep.mubr.msk.bf16.mxu0 %vm339_vm0, %v289_v2 }
  0x6a   : > { %949 = vmatmul.mubr.msk.bf16.gmra.mxu0 %vm339_vm0, %v290_v7 }
 0x112   : > { %v1222_v14 = vpop.f32.mrf.mxu0 }
 0x113   : > { %489 = vmax.xlane.f32.xlu1 %v1222_v14 }
 0x114   : > { %v1225_v15 = vpop.f32.mrf.mxu0 }
 0x115   : > { %485 = vmax.xlane.f32.xlu0 %v1225_v15 }
 0x116   : > { %v1228_v16 = vpop.f32.mrf.mxu0 }
 0x117   : > { %491 = vmax.xlane.f32.xlu1 %v1228_v16 }
 0x118   : > { %v1231_v17 = vpop.f32.mrf.mxu0 }
 0x119   : > { %487 = vmax.xlane.f32.xlu0 %v1231_v17 }
 0x11a   : > { %v1234_v18 = vpop.f32.mrf.mxu0 }
 0x11c   : > { %v1236_v19 = vpop.f32.mrf.mxu0 }
 0x11d   : > { %493 = vmax.xlane.f32.xlu0 %v1236_v19 }
 0x11e   : > { %v1241_v22 = vpop.f32.mrf.mxu0 }
 0x120   : > { %v1243_v24 = vpop.f32.mrf.mxu0 }
 0x121   : > { %497 = vmax.xlane.f32.xlu0 %v1234_v18  ;;  %495 = vmax.xlane.f32.xlu1 %v1243_v24 }
 0x122   : > { %v1249_v27 = vpop.f32.mrf.mxu0 }
 0x124   : > { %v1251_v29 = vpop.f32.mrf.mxu0 }
 0x125   : > { %499 = vmax.xlane.f32.xlu1 %v1241_v22  ;;  %501 = vmax.xlane.f32.xlu0 %v1251_v29 }
 0x126   : > { %v1257_v32 = vpop.f32.mrf.mxu0 }
 0x128   : > { %v1259_v34 = vpop.f32.mrf.mxu0 }
 0x129   : > { %505 = vmax.xlane.f32.xlu0 %v1249_v27  ;;  %503 = vmax.xlane.f32.xlu1 %v1259_v34 }
 0x12a   : > { %v1263_v35 = vpop.f32.mrf.mxu0 }
 0x12c   : > { %v1267_v39 = vpop.f32.mrf.mxu0 }
 0x12d   : > { %507 = vmax.xlane.f32.xlu1 %v1257_v32  ;;  %509 = vmax.xlane.f32.xlu0 %v1267_v39 }
 0x12e   : > { %v1271_v40 = vpop.f32.mrf.mxu0 }
 0x130   : > { %v1275_v44 = vpop.f32.mrf.mxu0 }
 0x131   : > { %513 = vmax.xlane.f32.xlu0 %v1263_v35  ;;  %511 = vmax.xlane.f32.xlu1 %v1275_v44 }
 0x135   : > { %515 = vmax.xlane.f32.xlu1 %v1271_v40 }
 0x19c   : > { %v490_v48 = vpop.xlane.xlu1 %489 }
 0x19d   : > { %v519_v49 = vsub.f32 %v1222_v14, %v490_v48 }
 0x19e   : > { %v486_v50 = vpop.xlane.xlu0 %485 }
 0x19f   : > { %v537_v51 = vmul.f32 1.442695, %v519_v49  ;;  %v517_v52 = vsub.f32 %v1225_v15, %v486_v50 }
 0x1a0   : > { %v492_v53 = vpop.xlane.xlu1 %491 }
 0x1a1   : > { %1016 = vpow2.f32 %v537_v51  ;;  %v533_v54 = vmul.f32 1.442695, %v517_v52  ;;  %v520_v55 = vsub.f32 %v1228_v16, %v492_v53 }
 0x1a2   : > { %v488_v56 = vpop.xlane.xlu0 %487 }
 0x1a3   : > { %v539_v57 = vmul.f32 1.442695, %v520_v55  ;;  %v518_v58 = vsub.f32 %v1231_v17, %v488_v56  ;;  %1018 = vpow2.f32 %v533_v54 }
 0x1a5   : > { %1020 = vpow2.f32 %v539_v57  ;;  %v535_v59 = vmul.f32 1.442695, %v518_v58 }
 0x1a6   : > { %v494_v60 = vpop.xlane.xlu0 %493 }
 0x1a7   : > { %1022 = vpow2.f32 %v535_v59  ;;  %v521_v61 = vsub.f32 %v1236_v19, %v494_v60 }
 0x1a9   : > { %v541_v62 = vmul.f32 1.442695, %v521_v61 }
 0x1aa   : > { %v498_v63 = vpop.xlane.xlu0 %497  ;;  %v496_v0 = vpop.xlane.xlu1 %495 }
 0x1ab   : > { %v523_v1 = vsub.f32 %v1234_v18, %v498_v63  ;;  %v522_v2 = vsub.f32 %v1243_v24, %v496_v0  ;;  %1024 = vpow2.f32 %v541_v62 }
 0x1ad   : > { %v545_v3 = vmul.f32 1.442695, %v523_v1  ;;  %v543_v4 = vmul.f32 1.442695, %v522_v2 }
 0x1ae   : > { %v1017_v5 = vpop.eup %1016  ;;  %v500_v6 = vpop.xlane.xlu1 %499 }
 0x1af   : > { %v502_v7 = vpop.xlane.xlu0 %501  ;;  %1026 = vpow2.f32 %v545_v3  ;;  %v524_v8 = vsub.f32 %v1241_v22, %v500_v6  ;;  %569 = vadd.xlane.f32.xlu0 %v1017_v5 }
 0x1b0   : > { %v525_v9 = vsub.f32 %v1251_v29, %v502_v7  ;;  %1028 = vpow2.f32 %v543_v4  ;;  %v1019_v10 = vpop.eup %1018 }
 0x1b1   : > { %v547_v11 = vmul.f32 1.442695, %v524_v8 }
 0x1b2   : > { %v1021_v12 = vpop.eup %1020  ;;  %v549_v13 = vmul.f32 1.442695, %v525_v9  ;;  %v504_v15 = vpop.xlane.xlu1 %503 }
 0x1b3   : > { %v506_v14 = vpop.xlane.xlu0 %505  ;;  %1030 = vpow2.f32 %v547_v11  ;;  %v526_v17 = vsub.f32 %v1259_v34, %v504_v15  ;;  %565 = vadd.xlane.f32.xlu0 %v1019_v10  ;;  %571 = vadd.xlane.f32.xlu1 %v1021_v12  ;;  %v598_v24 = vpack.c.bf16 %v1021_v12, %v1017_v5 }
 0x1b4   : > { %v527_v16 = vsub.f32 %v1249_v27, %v506_v14  ;;  %v1023_v18 = vpop.eup %1022  ;;  %1032 = vpow2.f32 %v549_v13 }
 0x1b5   : > { %v551_v20 = vmul.f32 1.442695, %v526_v17  ;;  %v597_v21 = vpack.c.bf16 %v1023_v18, %v1019_v10 }
 0x1b6   : > { %v553_v19 = vmul.f32 1.442695, %v527_v16  ;;  %v508_v22 = vpop.xlane.xlu1 %507 }
 0x1b7   : > { %v510_v23 = vpop.xlane.xlu0 %509  ;;  %v528_v25 = vsub.f32 %v1257_v32, %v508_v22  ;;  %968 = vmatprep.mubr.bf16.mxu1 %v597_v21  ;;  %567 = vadd.xlane.f32.xlu1 %v1023_v18 }
 0x1b8   : > { %1034 = vpow2.f32 %v553_v19  ;;  %v529_v26 = vsub.f32 %v1267_v39, %v510_v23  ;;  %969 = vmatmul.mubr.bf16.vlgmr.msra.gmra.mxu1 %v598_v24  ;;  %v1025_v30 = vpop.eup %1024 }
 0x1b9   : > { %1036 = vpow2.f32 %v551_v20  ;;  %v555_v27 = vmul.f32 1.442695, %v528_v25 }
 0x1ba   : > { %v512_v29 = vpop.xlane.xlu1 %511  ;;  %v557_v31 = vmul.f32 1.442695, %v529_v26 }
 0x1bb   : > { %v514_v28 = vpop.xlane.xlu0 %513  ;;  %1038 = vpow2.f32 %v555_v27  ;;  %v530_v34 = vsub.f32 %v1275_v44, %v512_v29 }
 0x1bc   : > { %v531_v33 = vsub.f32 %v1263_v35, %v514_v28  ;;  %v1027_v36 = vpop.eup %1026  ;;  %1040 = vpow2.f32 %v557_v31 }
 0x1bd   : > { %v1029_v37 = vpop.eup %1028  ;;  %v559_v38 = vmul.f32 1.442695, %v530_v34  ;;  %577 = vadd.xlane.f32.xlu0 %v1027_v36 }
 0x1be   : > { %v561_v32 = vmul.f32 1.442695, %v531_v33  ;;  %v516_v39 = vpop.xlane.xlu1 %515  ;;  %v599_v41 = vpack.c.bf16 %v1029_v37, %v1025_v30 }
 0x1bf   : > { %v532_v42 = vsub.f32 %v1271_v40, %v516_v39  ;;  %1042 = vpow2.f32 %v559_v38 }
 0x1c0   : > { %v1031_v43 = vpop.eup %1030  ;;  %972 = vmatprep.mubr.bf16.mxu1 %v599_v41  ;;  %1044 = vpow2.f32 %v561_v32 }
 0x1c1   : > { %v563_v45 = vmul.f32 1.442695, %v532_v42  ;;  %573 = vadd.xlane.f32.xlu0 %v1025_v30  ;;  %579 = vadd.xlane.f32.xlu1 %v1031_v43  ;;  %v600_v46 = vpack.c.bf16 %v1031_v43, %v1027_v36  ;;  %v1033_v35 = vpop.eup %1032 }
 0x1c3   : > { %1046 = vpow2.f32 %v563_v45  ;;  %973 = vmatmul.mubr.bf16.gmra.mxu1 %v600_v46 }
 0x1c5   : > { %v1035_v44 = vpop.eup %1034  ;;  %575 = vadd.xlane.f32.xlu1 %v1029_v37 }
 0x1c6   : > { %v1037_v47 = vpop.eup %1036  ;;  %585 = vadd.xlane.f32.xlu0 %v1035_v44 }
 0x1c7   : > { %v601_v48 = vpack.c.bf16 %v1037_v47, %v1033_v35 }
 0x1c8   : > { %v1039_v49 = vpop.eup %1038 }
 0x1c9   : > { %976 = vmatprep.mubr.bf16.mxu1 %v601_v48  ;;  %587 = vadd.xlane.f32.xlu1 %v1039_v49  ;;  %v602_v40 = vpack.c.bf16 %v1039_v49, %v1035_v44  ;;  %v1041_v50 = vpop.eup %1040 }
 0x1ca   : > { %581 = vadd.xlane.f32.xlu0 %v1033_v35 }
 0x1cb   : > { %977 = vmatmul.mubr.bf16.gmra.mxu1 %v602_v40 }
 0x1cc   : > { %v1043_v51 = vpop.eup %1042 }
 0x1cd   : > { %583 = vadd.xlane.f32.xlu1 %v1037_v47  ;;  %v603_v52 = vpack.c.bf16 %v1043_v51, %v1041_v50  ;;  %v1045_v53 = vpop.eup %1044 }
 0x1ce   : > { %589 = vadd.xlane.f32.xlu0 %v1041_v50 }
 0x1cf   : > { %980 = vmatprep.mubr.bf16.mxu1 %v603_v52 }
 0x1d0   : > { %v1047_v54 = vpop.eup %1046 }
 0x1d1   : > { %591 = vadd.xlane.f32.xlu1 %v1043_v51  ;;  %v604_v55 = vpack.c.bf16 %v1047_v54, %v1045_v53 }
 0x1d2   : > { %593 = vadd.xlane.f32.xlu0 %v1045_v53 }
 0x1d3   : > { %981 = vmatmul.mubr.bf16.gmra.mxu1 %v604_v55 }
 0x1d5   : > { %595 = vadd.xlane.f32.xlu1 %v1047_v54 }
 0x238   : > { %v570_v56 = vpop.xlane.xlu0 %569 }
 0x239   : > { %1048 = vrcp.f32 %v570_v56 }
 0x23c   : > { %v572_v57 = vpop.xlane.xlu1 %571  ;;  %v566_v58 = vpop.xlane.xlu0 %565 }
 0x23d   : > { %1050 = vrcp.f32 %v566_v58 }
 0x23e   : > { %1052 = vrcp.f32 %v572_v57 }
 0x240   : > { %v568_v59 = vpop.xlane.xlu1 %567 }
 0x241   : > { %1054 = vrcp.f32 %v568_v59 }
 0x246   : > { %v578_v60 = vpop.xlane.xlu0 %577  ;;  %v1049_v3 = vpop.eup %1048 }
 0x247   : > { %1056 = vrcp.f32 %v578_v60 }
 0x24a   : > { %v580_v61 = vpop.xlane.xlu1 %579  ;;  %v574_v62 = vpop.xlane.xlu0 %573 }
 0x24b   : > { %1058 = vrcp.f32 %v574_v62  ;;  %v1051_v6 = vpop.eup %1050 }
 0x24c   : > { %1060 = vrcp.f32 %v580_v61  ;;  %v1053_v10 = vpop.eup %1052 }
 0x24e   : > { %v576_v63 = vpop.xlane.xlu1 %575  ;;  %v1055_v14 = vpop.eup %1054 }
 0x24f   : > { %v586_v0 = vpop.xlane.xlu0 %585  ;;  %1062 = vrcp.f32 %v576_v63 }
 0x250   : > { %1064 = vrcp.f32 %v586_v0 }
 0x252   : > { %v588_v1 = vpop.xlane.xlu1 %587 }
 0x253   : > { %v582_v2 = vpop.xlane.xlu0 %581 }
 0x254   : > { %1066 = vrcp.f32 %v582_v2  ;;  %v1057_v18 = vpop.eup %1056 }
 0x255   : > { %1068 = vrcp.f32 %v588_v1 }
 0x256   : > { %v584_v8 = vpop.xlane.xlu1 %583 }
 0x257   : > { %v590_v12 = vpop.xlane.xlu0 %589  ;;  %1070 = vrcp.f32 %v584_v8 }
 0x258   : > { %v1059_v22 = vpop.eup %1058 }
 0x259   : > { %v1061_v25 = vpop.eup %1060 }
 0x25a   : > { %v592_v17 = vpop.xlane.xlu1 %591 }
 0x25b   : > { %v594_v19 = vpop.xlane.xlu0 %593 }
 0x25c   : > { %1072 = vrcp.f32 %v594_v19  ;;  %v1063_v29 = vpop.eup %1062 }
 0x25d   : > { %1074 = vrcp.f32 %v590_v12  ;;  %v1065_v33 = vpop.eup %1064 }
 0x25e   : > { %v596_v26 = vpop.xlane.xlu1 %595 }
 0x25f   : > { %1076 = vrcp.f32 %v596_v26 }
 0x260   : > { %1078 = vrcp.f32 %v592_v17 }
 0x261   : > { %v1067_v37 = vpop.eup %1066 }
 0x262   : > { %v1069_v39 = vpop.eup %1068 }
 0x264   : > { %v1071_v43 = vpop.eup %1070 }
 0x269   : > { %v1073_v35 = vpop.eup %1072 }
 0x26a   : > { %v1075_v48 = vpop.eup %1074 }
 0x26c   : > { %v1077_v50 = vpop.eup %1076 }
 0x26d   : > { %v1079_v53 = vpop.eup %1078 }
 0x278   : > { %v970_v4 = vpop.f32.mrf.mxu1 }
 0x279   : > { %v720_v5 = vmul.f32 %v1049_v3, %v970_v4 }
 0x27a   : > { %v639_v7 = vpop.f32.mrf.mxu1 }
 0x27b   : > { %736 = vst.msk [vmem:[%s1302_s28 + $0x10] sm:$0xff] %vm339_vm0, %v720_v5  ;;  %v718_v9 = vmul.f32 %v1051_v6, %v639_v7 }
 0x27c   : > { %v971_v11 = vpop.f32.mrf.mxu1 }
 0x27d   : > { %734 = vst.msk [vmem:[%s1302_s28] sm:$0xff] %vm339_vm0, %v718_v9  ;;  %v721_v13 = vmul.f32 %v1053_v10, %v971_v11 }
 0x27e   : > { %v642_v15 = vpop.f32.mrf.mxu1 }
 0x27f   : > { %737 = vst.msk [vmem:[%s1302_s28 + $0x18] sm:$0xff] %vm339_vm0, %v721_v13  ;;  %v719_v16 = vmul.f32 %v1055_v14, %v642_v15 }
 0x281   : > { %735 = vst.msk [vmem:[%s1302_s28 + $0x8] sm:$0xff] %vm339_vm0, %v719_v16 }
 0x283   : > { %v974_v20 = vpop.f32.mrf.mxu1 }
 0x284   : > { %v724_v21 = vmul.f32 %v1057_v18, %v974_v20 }
 0x285   : > { %v655_v23 = vpop.f32.mrf.mxu1 }
 0x286   : > { %740 = vst.msk [vmem:[%s1302_s28 + $0x30] sm:$0xff] %vm339_vm0, %v724_v21  ;;  %v722_v24 = vmul.f32 %v1059_v22, %v655_v23 }
 0x287   : > { %v975_v27 = vpop.f32.mrf.mxu1 }
 0x288   : > { %738 = vst.msk [vmem:[%s1302_s28 + $0x20] sm:$0xff] %vm339_vm0, %v722_v24  ;;  %v725_v28 = vmul.f32 %v1061_v25, %v975_v27 }
 0x289   : > { %v658_v30 = vpop.f32.mrf.mxu1 }
 0x28a   : > { %741 = vst.msk [vmem:[%s1302_s28 + $0x38] sm:$0xff] %vm339_vm0, %v725_v28  ;;  %v723_v31 = vmul.f32 %v1063_v29, %v658_v30 }
 0x28b   : > { %v978_v34 = vpop.f32.mrf.mxu1 }
 0x28c   : > { %739 = vst.msk [vmem:[%s1302_s28 + $0x28] sm:$0xff] %vm339_vm0, %v723_v31  ;;  %v728_v36 = vmul.f32 %v1065_v33, %v978_v34 }
 0x28d   : > { %v671_v38 = vpop.f32.mrf.mxu1 }
 0x28e   : > { %744 = vst.msk [vmem:[%s1302_s28 + $0x50] sm:$0xff] %vm339_vm0, %v728_v36  ;;  %v726_v32 = vmul.f32 %v1067_v37, %v671_v38 }
 0x28f   : > { %v979_v41 = vpop.f32.mrf.mxu1 }
 0x290   : > { %742 = vst.msk [vmem:[%s1302_s28 + $0x40] sm:$0xff] %vm339_vm0, %v726_v32  ;;  %v729_v42 = vmul.f32 %v1069_v39, %v979_v41 }
 0x291   : > { %v674_v45 = vpop.f32.mrf.mxu1 }
 0x292   : > { %745 = vst.msk [vmem:[%s1302_s28 + $0x58] sm:$0xff] %vm339_vm0, %v729_v42  ;;  %v727_v46 = vmul.f32 %v1071_v43, %v674_v45 }
 0x293   : > { %v982_v44 = vpop.f32.mrf.mxu1 }
 0x294   : > { %743 = vst.msk [vmem:[%s1302_s28 + $0x48] sm:$0xff] %vm339_vm0, %v727_v46  ;;  %v732_v47 = vmul.f32 %v1073_v35, %v982_v44 }
 0x295   : > { %v687_v49 = vpop.f32.mrf.mxu1 }
 0x296   : > { %748 = vst.msk [vmem:[%s1302_s28 + $0x70] sm:$0xff] %vm339_vm0, %v732_v47  ;;  %v730_v40 = vmul.f32 %v1075_v48, %v687_v49 }
 0x297   : > { %v983_v51 = vpop.f32.mrf.mxu1 }
 0x298   : > { %746 = vst.msk [vmem:[%s1302_s28 + $0x60] sm:$0xff] %vm339_vm0, %v730_v40  ;;  %v733_v52 = vmul.f32 %v1077_v50, %v983_v51 }
 0x299   : > { %v690_v54 = vpop.f32.mrf.mxu1 }
 0x29a   : > { %749 = vst.msk [vmem:[%s1302_s28 + $0x78] sm:$0xff] %vm339_vm0, %v733_v52  ;;  %v731_v55 = vmul.f32 %v1079_v53, %v690_v54 }
 0x29c   : > { %747 = vst.msk [vmem:[%s1302_s28 + $0x68] sm:$0xff] %vm339_vm0, %v731_v55 }
 0x29d PF: > { %s13_s14 = sadd.s32 1, %s1102_s14   ;;  %s1349_s12 = smov %s1098_s13 }
 0x29e   : > { %p10_p5 = scmp.ge.s32.totalorder %s13_s14, 10   ;;  %s1350_s13 = smov %s1352_s15 }
 0x2a0   :  { %12 = sbr.rel (!%p10_p5) target bundleno = 2 (0x2), region = 68 }

</bundles_post_ra>
